<compile_context>
chip_gen: v5e
topology: v5e:2x2
jax: 0.10.0
libtpu: 0.0.40
codegen_flags: <defaults>
</compile_context>

<pallas_src>
import functools

import jax
import jax.numpy as jnp
from jax.experimental import pallas as pl
from jax.experimental.pallas import tpu as pltpu


def _bpr_kernel(u_ref, i_ref, n_ref, o_ref, *, total_batch, tb, mask_tail):
    """One batch tile of the BPR loss.

    u_ref / i_ref / n_ref : (tb, D) user / pos-item / neg-item embedding tiles.
    o_ref                 : (1, 8, 128) lane-dense slab; the tile's partial sum
                            is splatted into it (wrapper reads [:, 0, 0]).
    """
    u = u_ref[...].astype(jnp.float32)
    diff = n_ref[...].astype(jnp.float32) - i_ref[...].astype(jnp.float32)
    # Fused score difference:  <u, n> - <u, i>  ==  <u, n - i>
    x = jnp.sum(u * diff, axis=-1, keepdims=True)                  # (tb, 1)
    # Numerically-stable softplus: max(x, 0) + log1p(exp(-|x|))
    sp = jnp.maximum(x, 0.0) + jnp.log1p(jnp.exp(-jnp.abs(x)))     # (tb, 1)
    if mask_tail:
        # Zero out rows past the end of the batch (padded tail tile).
        row = (jax.lax.broadcasted_iota(jnp.int32, (tb, 1), 0)
               + pl.program_id(0) * tb)
        sp = jnp.where(row < total_batch, sp, 0.0)
    partial = jnp.sum(sp)
    # Lane-dense, unmasked store of the per-tile partial.
    o_ref[...] = jnp.full((1, 8, 128), partial, dtype=o_ref.dtype)


def _pick_tile(batch, dim):
    # VMEM budget: 3 inputs x 2 pipeline buffers x tb x D_pad x 4B <= ~10 MiB
    # (D is lane-padded to a multiple of 128 inside VMEM).  Stays under the
    # default scoped-VMEM limit on every generation; cap at 4096 rows.
    d_pad = pl.cdiv(dim, 128) * 128
    tb = (10 * 1024 * 1024) // (3 * 2 * d_pad * 4)
    return max(8, min(tb, 4096))


def bpr_loss_pallas(users_emb, items_emb, neg_item_emb, *, tb=None):
    """users_emb, items_emb, neg_item_emb: (B, D) float32. Returns scalar loss."""
    B, D = users_emb.shape
    if tb is None:
        tb = _pick_tile(B, D)
    if tb >= B:
        tb = B                              # single tile == full array dims (legal)
    else:
        tb = max(8, (tb // 8) * 8)          # sublane-aligned tile, masked tail
    num_tiles = pl.cdiv(B, tb)

    kernel = functools.partial(
        _bpr_kernel, total_batch=B, tb=tb, mask_tail=(B % tb != 0))

    partials = pl.pallas_call(
        kernel,
        out_shape=jax.ShapeDtypeStruct((num_tiles, 8, 128), jnp.float32),
        grid_spec=pltpu.PrefetchScalarGridSpec(
            num_scalar_prefetch=0,
            grid=(num_tiles,),
            in_specs=[
                pl.BlockSpec((tb, D), lambda i: (i, 0)),
                pl.BlockSpec((tb, D), lambda i: (i, 0)),
                pl.BlockSpec((tb, D), lambda i: (i, 0)),
            ],
            out_specs=pl.BlockSpec((1, 8, 128), lambda i: (i, 0, 0)),
        ),
        compiler_params=pltpu.CompilerParams(
            dimension_semantics=("parallel",)),
    )(users_emb, items_emb, neg_item_emb)

    return jnp.sum(partials[:, 0, 0]) / jnp.float32(B)


def xavier_normal(key, shape):
    fan_out, fan_in = shape  # nn.Embedding weight: (num_embeddings, dim)
    std = (2.0 / (fan_in + fan_out)) ** 0.5
    return std * jax.random.normal(key, shape, dtype=jnp.float32)


class MFPallas:
    """JAX/Pallas port of the PyTorch MF module's forward pass (BPR loss)."""

    def __init__(self, num_users, num_items, dim, key):
        ku, ki = jax.random.split(key)
        self.user_emb = xavier_normal(ku, (num_users, dim))   # (U, D)
        self.item_emb = xavier_normal(ki, (num_items, dim))   # (I, D)

    def forward(self, users, items, negatives):
        # users: (B,) int32 ; items: (B,) int32 ; negatives: (B, 1) int32 (K=1)
        # TODO(synk): fuse these embedding gathers into the kernel (scalar-prefetch
        # index_map / DMA gather) to avoid re-reading the gathered (B, D) copies
        # from HBM; skipped because D=32 makes per-row DMAs too small to pay off.
        users_emb = self.user_emb[users]                       # (B, D)
        items_emb = self.item_emb[items]                       # (B, D)
        neg = negatives if negatives.ndim == 1 else negatives[:, 0]
        neg_item_embs = self.item_emb[neg]                     # (B, D)
        return bpr_loss_pallas(users_emb, items_emb, neg_item_embs)


def reference_forward(user_tab, item_tab, users, items, negatives):
    users_emb = user_tab[users]                                     # (B, D)
    items_emb = item_tab[items]                                     # (B, D)
    neg_item_embs = item_tab[negatives]                             # (B, 1, D)
    pos_scores = jnp.sum(users_emb * items_emb, axis=1)             # (B,)
    neg_k = jnp.sum(users_emb[:, None, :] * neg_item_embs, axis=-1) # (B, 1)
    neg_scores = jnp.squeeze(neg_k, axis=-1)                        # (B,)
    return jnp.mean(jax.nn.softplus(neg_scores - pos_scores))


if __name__ == "__main__":
    key = jax.random.PRNGKey(0)
    k_model, k_u, k_i, k_n = jax.random.split(key, 4)

    num_users, num_items, dim = 64, 128, 32
    batch = 16

    model = MFPallas(num_users, num_items, dim, k_model)

    users = jax.random.randint(k_u, (batch,), 0, num_users, dtype=jnp.int32)
    items = jax.random.randint(k_i, (batch,), 0, num_items, dtype=jnp.int32)
    negatives = jax.random.randint(k_n, (batch, 1), 0, num_items, dtype=jnp.int32)

    loss = jax.block_until_ready(model.forward(users, items, negatives))
    ref = jax.block_until_ready(
        reference_forward(model.user_emb, model.item_emb, users, items, negatives))
    assert jnp.allclose(loss, ref, rtol=1e-5, atol=1e-5), (loss, ref)

    # Exercise the masked-tail path: batch not divisible by the tile.
    b2 = 13
    u2, i2, n2 = users[:b2], items[:b2], negatives[:b2]
    loss2 = jax.block_until_ready(
        bpr_loss_pallas(model.user_emb[u2], model.item_emb[i2],
                        model.item_emb[n2[:, 0]], tb=8))
    ref2 = jax.block_until_ready(
        reference_forward(model.user_emb, model.item_emb, u2, i2, n2))
    assert jnp.allclose(loss2, ref2, rtol=1e-5, atol=1e-5), (loss2, ref2)

    print("KERNEL_OK")
</pallas_src>

<mosaic_0001>
module attributes {stable_mosaic.version = 11 : i64} {
  func.func @_bpr_kernel(%arg0: i32, %arg1: memref<16x32xf32, #tpu.memory_space<vmem>>, %arg2: memref<16x32xf32, #tpu.memory_space<vmem>>, %arg3: memref<16x32xf32, #tpu.memory_space<vmem>>, %arg4: memref<1x8x128xf32, #tpu.memory_space<vmem>>) attributes {dimension_semantics = [#tpu.dimension_semantics<parallel>], iteration_bounds = array<i64: 1>, scalar_prefetch = 0 : i64, scratch_operands = 0 : i64, tpu.core_type = #tpu.core_type<tc>, window_params = [{transform_indices = @transform_0, window_bounds = array<i64: 16, 32>}, {transform_indices = @transform_1, window_bounds = array<i64: 16, 32>}, {transform_indices = @transform_2, window_bounds = array<i64: 16, 32>}, {transform_indices = @transform_3, window_bounds = array<i64: 1, 8, 128>}]} {
    %c0 = arith.constant 0 : index
    %c0_0 = arith.constant 0 : index
    %0 = vector.load %arg1[%c0, %c0_0] : memref<16x32xf32, #tpu.memory_space<vmem>>, vector<16x32xf32>
    %c0_1 = arith.constant 0 : index
    %c0_2 = arith.constant 0 : index
    %1 = vector.load %arg3[%c0_1, %c0_2] : memref<16x32xf32, #tpu.memory_space<vmem>>, vector<16x32xf32>
    %c0_3 = arith.constant 0 : index
    %c0_4 = arith.constant 0 : index
    %2 = vector.load %arg2[%c0_3, %c0_4] : memref<16x32xf32, #tpu.memory_space<vmem>>, vector<16x32xf32>
    %3 = arith.subf %1, %2 : vector<16x32xf32>
    %4 = arith.mulf %0, %3 : vector<16x32xf32>
    %cst = arith.constant dense<0.000000e+00> : vector<16xf32>
    %5 = vector.multi_reduction <add>, %4, %cst [1] : vector<16x32xf32> to vector<16xf32>
    %6 = vector.shape_cast %5 : vector<16xf32> to vector<16x1xf32>
    %cst_5 = arith.constant 0.000000e+00 : f32
    %7 = vector.broadcast %cst_5 : f32 to vector<16x1xf32>
    %8 = arith.maximumf %6, %7 : vector<16x1xf32>
    %9 = math.absf %6 : vector<16x1xf32>
    %cst_6 = arith.constant 0.000000e+00 : f32
    %10 = vector.broadcast %cst_6 : f32 to vector<16x1xf32>
    %11 = arith.subf %10, %9 : vector<16x1xf32>
    %12 = math.exp %11 : vector<16x1xf32>
    %13 = math.log1p %12 : vector<16x1xf32>
    %14 = arith.addf %8, %13 : vector<16x1xf32>
    %15 = vector.shape_cast %14 : vector<16x1xf32> to vector<1x16x1xf32>
    %cst_7 = arith.constant dense<0.000000e+00> : vector<1xf32>
    %16 = vector.multi_reduction <add>, %15, %cst_7 [1, 2] : vector<1x16x1xf32> to vector<1xf32>
    %17 = vector.shape_cast %16 : vector<1xf32> to vector<1x1x1xf32>
    %18 = vector.extract %17[0, 0, 0] : f32 from vector<1x1x1xf32>
    %19 = vector.broadcast %18 : f32 to vector<1x8x128xf32>
    %c0_8 = arith.constant 0 : index
    %c0_9 = arith.constant 0 : index
    %c0_10 = arith.constant 0 : index
    %20 = vector.load %arg4[%c0_8, %c0_9, %c0_10] : memref<1x8x128xf32, #tpu.memory_space<vmem>>, vector<1x8x128xf32>
    tpu.vector_store %arg4[%c0_8, %c0_9, %c0_10], %19 {strides = array<i32>} : memref<1x8x128xf32, #tpu.memory_space<vmem>>, vector<1x8x128xf32>,
    return
  }
  func.func @transform_0(%arg0: i32) -> (i32, i32) {
    %c0_i32 = arith.constant 0 : i32
    %c0_i32_0 = arith.constant 0 : i32
    return %arg0, %c0_i32 : i32, i32
  }
  func.func @transform_1(%arg0: i32) -> (i32, i32) {
    %c0_i32 = arith.constant 0 : i32
    %c0_i32_0 = arith.constant 0 : i32
    return %arg0, %c0_i32 : i32, i32
  }
  func.func @transform_2(%arg0: i32) -> (i32, i32) {
    %c0_i32 = arith.constant 0 : i32
    %c0_i32_0 = arith.constant 0 : i32
    return %arg0, %c0_i32 : i32, i32
  }
  func.func @transform_3(%arg0: i32) -> (i32, i32, i32) {
    %c0_i32 = arith.constant 0 : i32
    %c0_i32_0 = arith.constant 0 : i32
    %c0_i32_1 = arith.constant 0 : i32
    return %arg0, %c0_i32, %c0_i32_0 : i32, i32, i32
  }
}

</mosaic_0001>

<bundles_post_ra>
// kernel: tpu_custom_call.1
= control target key start
LH: loop header
LB: loop body
LE: loop exit
PB: predicated region body
PF: predicated region fallthrough
CT: control target
= control target key end

     0   :  { %8 = vsyncpa [#allocation3], 0  ;;  %s298_s0 = inlined_call_operand.hbm [shape: f32[16,32], index: 0, kind: input, shape index: {}]   ;;  %s299_s1 = inlined_call_operand.hbm [shape: f32[16,32], index: 1, kind: input, shape index: {}]   ;;  %s300_s2 = inlined_call_operand.hbm [shape: f32[16,32], index: 2, kind: input, shape index: {}]   ;;  %s301_s3 = inlined_call_operand.hbm [shape: f32[1,8,128], index: 3, kind: output, shape index: {}]  }
   0x1   :  { %9 = vsyncpa [#allocation6], 0 }
   0x2   :  { %10 = vsyncpa [#allocation4], 0  ;;  %s28_s14 = sshll.u32 %s299_s1, 4  ;;  %s260_s15 = smov [#allocation5]   ;;  %s29_s14 = int_to_ptr.hbm [resolvable:$true] %s28_s14 }
   0x3   :  { %s30_s16 = sshll.u32 %s260_s15, 4  ;;  %s15_s19 = sshll.u32 %s298_s0, 4  ;;  %s31_s16 = int_to_ptr.vmem [resolvable:$true] %s30_s16  ;;  %s16_s19 = int_to_ptr.hbm [resolvable:$true] %s15_s19 }
   0x4   :  { %s261_s20 = smov 128   ;;  %s262_s21 = smov 8  }
   0x5   :  { %36 = dma.hbm_to_vmem [thread:$0]  %s29_s14, 256, %s31_s16, [#allocation6], %s261_s20, %s261_s20, %s262_s21  }
   0x6   :  { %s263_s22 = smov [#allocation2]   ;;  %s41_s26 = sshll.u32 %s300_s2, 4  ;;  %s42_s26 = int_to_ptr.hbm [resolvable:$true] %s41_s26 }
   0x7   :  { %s17_s23 = sshll.u32 %s263_s22, 4  ;;  %s264_s1 = smov [#allocation7]   ;;  %s18_s23 = int_to_ptr.vmem [resolvable:$true] %s17_s23 }
   0x8   :  { %23 = dma.hbm_to_vmem [thread:$0]  %s16_s19, 256, %s18_s23, [#allocation3], %s261_s20, %s261_s20, %s262_s21  }
   0x9   :  { %s43_s27 = sshll.u32 %s264_s1, 4  ;;  %s44_s27 = int_to_ptr.vmem [resolvable:$true] %s43_s27 }
   0xa   :  { %49 = dma.hbm_to_vmem [thread:$0]  %s42_s26, 256, %s44_s27, [#allocation6], %s261_s20, %s261_s20, %s262_s21  }
   0xb   :  { %254 = dma.done.wait [#allocation3], 256  }
   0xc   :  { %255 = vsyncadd [#allocation3], 4294967040 }
   0xd   :  { %256 = dma.done.wait [#allocation6], 512  }
   0xe   :  { %257 = vsyncadd [#allocation6], 4294966784  ;;  %v62_v0 = vld [vmem:[#allocation2] sm:$0xff]  ;;  %v66_v2 = vld [vmem:[#allocation5] sm:$0xff]  ;;  %vm72_vm0 = vcmask 261120   ;;  %vm109_vm3 = vcmask 7168  }
   0xf   :  { %v64_v1 = vld [vmem:[#allocation7] sm:$0xff]  ;;  %v65_v4 = vld [vmem:[#allocation7 + $0x8] sm:$0xff]  ;;  %v67_v5 = vld [vmem:[#allocation5 + $0x8] sm:$0xff]  ;;  %s265_s0 = smov [#allocation8]   ;;  %s131_s30 = sshll.u32 %s301_s3, 4  ;;  %s132_s30 = int_to_ptr.hbm [resolvable:$true] %s131_s30 }
  0x10   :  { %v68_v3 = vsub.f32 %v64_v1, %v66_v2  ;;  %v69_v7 = vsub.f32 %v65_v4, %v67_v5  ;;  %v63_v8 = vld [vmem:[#allocation2 + $0x8] sm:$0xff]  ;;  %s129_s2 = sshll.u32 %s265_s0, 4  ;;  %s130_s2 = int_to_ptr.vmem [resolvable:$true] %s129_s2 }
  0x12   :  { %v70_v6 = vmul.f32 %v68_v3, %v62_v0  ;;  %v71_v10 = vmul.f32 %v69_v7, %v63_v8 }
  0x14   :  { %v73_v9 = vsel %vm72_vm0, %v70_v6, 0.0  ;;  %v76_v11 = vsel %vm72_vm0, %v71_v10, 0.0 }
  0x15   :  { %74 = vadd.xlane.f32.xlu0 %v73_v9 }
  0x1d   :  { %77 = vadd.xlane.f32.xlu0 %v76_v11 }
  0x88   :  { %v75_v12 = vpop.xlane.xlu0 %74 }
  0x89   :  { %v81_v13 = vand.u32 2147483647, %v75_v12  ;;  %v79_v35 = vmax.f32 %v75_v12, 0.0 }
  0x8b   :  { %v83_v14 = vsub.f32 0.0, %v81_v13 }
  0x8d   :  { %v85_v15 = vmul.f32 1.442695, %v83_v14 }
  0x8f   :  { %150 = vpow2.f32 %v85_v15 }
  0x90   :  { %v78_v16 = vpop.xlane.xlu0 %77 }
  0x91   :  { %v82_v17 = vand.u32 2147483647, %v78_v16  ;;  %v80_v38 = vmax.f32 %v78_v16, 0.0 }
  0x93   :  { %v84_v18 = vsub.f32 0.0, %v82_v17 }
  0x95   :  { %v151_v19 = vpop.eup %150  ;;  %v87_v20 = vmul.f32 1.442695, %v84_v18 }
  0x96   :  { %v89_v21 = vadd.f32 1.0, %v151_v19  ;;  %v92_v22 = vmul.f32 -0.5, %v151_v19  ;;  %v95_v28 = vand.u32 2147483647, %v151_v19 }
  0x97   :  { %152 = vpow2.f32 %v87_v20 }
  0x98   :  { %154 = vlog2.f32 %v89_v21  ;;  %v93_v27 = vadd.f32 1.0, %v92_v22  ;;  %vm96_vm1 = vcmp.lt.f32.partialorder %v95_v28, 0.0004427343 }
  0x9a   :  { %v94_v31 = vmul.f32 %v151_v19, %v93_v27 }
  0x9d   :  { %v153_v23 = vpop.eup %152 }
  0x9e   :  { %v155_v24 = vpop.eup %154  ;;  %v98_v25 = vadd.f32 1.0, %v153_v23  ;;  %v101_v26 = vmul.f32 -0.5, %v153_v23  ;;  %v104_v32 = vand.u32 2147483647, %v153_v23 }
  0x9f   :  { %v91_v29 = vmul.f32 0.6931472, %v155_v24 }
  0xa0   :  { %156 = vlog2.f32 %v98_v25  ;;  %v102_v30 = vadd.f32 1.0, %v101_v26  ;;  %vm105_vm2 = vcmp.lt.f32.partialorder %v104_v32, 0.0004427343 }
  0xa1   :  { %v97_v33 = vsel %vm96_vm1, %v94_v31, %v91_v29 }
  0xa2   :  { %v103_v37 = vmul.f32 %v153_v23, %v102_v30  ;;  %v107_v39 = vadd.f32 %v97_v33, %v79_v35 }
  0xa4   :  { %v110_v42 = vsel %vm109_vm3, %v107_v39, 0.0 }
  0xa6   :  { %v157_v34 = vpop.eup %156 }
  0xa7   :  { %v100_v36 = vmul.f32 0.6931472, %v157_v34 }
  0xa9   :  { %v106_v40 = vsel %vm105_vm2, %v103_v37, %v100_v36 }
  0xaa   :  { %v108_v41 = vadd.f32 %v106_v40, %v80_v38 }
  0xac   :  { %v111_v43 = vsel %vm109_vm3, %v108_v41, 0.0 }
  0xad   :  { %v112_v44 = vadd.f32 %v111_v43, %v110_v42 }
  0xaf   :  { %113 = vadd.xlane.f32.xlu1 %v112_v44 }
 0x122   :  { %v114_v45 = vpop.xlane.xlu1 %113 }
 0x123   :  { %v115_v46 = vrot.slane %v114_v45, 4 }
 0x125   :  { %v116_v47 = vadd.f32 %v115_v46, %v114_v45 }
 0x127   :  { %v117_v48 = vrot.slane %v116_v47, 2 }
 0x129   :  { %v118_v49 = vadd.f32 %v117_v48, %v116_v47 }
 0x12b   :  { %v119_v50 = vrot.slane %v118_v49, 1 }
 0x12d   :  { %v120_v51 = vadd.f32 %v119_v50, %v118_v49 }
 0x12f   :  { %142 = vpush %v120_v51 }
 0x160   :  { %s143_s4 = spop %142 }
 0x161   :  { %v122_v52 = vstv %s143_s4 }
 0x162   :  { %123 = vst [vmem:[#allocation8] sm:$0xff] %v122_v52 }
 0x163   :  { %134 = dma.vmem_to_hbm [thread:$0]  %s130_s2, 128, %s132_s30, [#allocation4]  }
 0x164   :  { %258 = dma.done.wait [#allocation4], 128  }
 0x165   :  { %259 = vsyncadd [#allocation4], 4294967168 }
 0x166   :  { %139 = vsyncpa [#allocation3], 1 }
 0x167   :  { %140 = vsyncpa [#allocation6], 1 }
 0x168   :  { %141 = vsyncpa [#allocation4], 1 }

</bundles_post_ra>
